<compile_context>
chip_gen: v7x
topology: tpu7x:2x2x1
jax: 0.10.0
libtpu: 0.0.40
codegen_flags: <defaults>
</compile_context>

<pallas_src>
import functools

import jax
import jax.numpy as jnp
from jax.experimental import pallas as pl
from jax.experimental.pallas import tpu as pltpu


def _round_up(x, m):
    return ((x + m - 1) // m) * m


def _graph_encoder_kernel(a_ref, x_ref, w1_ref, w2_ref, out_ref, *, inv_n):
    # a_ref : (Bt, Np, Np) bf16     x_ref : (Bt, Np, Fp) bf16
    # w1_ref: (Fp, Hp)     bf16     w2_ref: (Hp, Ep)     bf16
    # out_ref: (Bt, Ep) f32   (lane-dense, Ep multiple of 128)
    Bt, Np, _ = a_ref.shape
    Fp = x_ref.shape[-1]
    Hp = w1_ref.shape[-1]
    Ep = w2_ref.shape[-1]

    a = a_ref[...]
    x = x_ref[...]
    w1 = w1_ref[...]
    w2 = w2_ref[...]

    # ---- GNN layer 1: relu(A @ (X @ W1)) ----
    # Stack the Bt graphs into a single (Bt*Np, Fp) matmul to fill the MXU.
    # Collapsing leading dims is layout-free (Np is a multiple of 8).
    xw1 = jnp.dot(x.reshape(Bt * Np, Fp), w1,
                  preferred_element_type=jnp.float32)            # (Bt*Np, Hp) f32
    xw1 = xw1.astype(jnp.bfloat16).reshape(Bt, Np, Hp)
    h1 = jnp.maximum(
        jnp.einsum("bij,bjh->bih", a, xw1,
                   preferred_element_type=jnp.float32), 0.0)     # (Bt, Np, Hp) f32
    h1 = h1.astype(jnp.bfloat16)

    # ---- GNN layer 2: relu(A @ (H1 @ W2)) ----
    hw2 = jnp.dot(h1.reshape(Bt * Np, Hp), w2,
                  preferred_element_type=jnp.float32)            # (Bt*Np, Ep) f32
    hw2 = hw2.astype(jnp.bfloat16).reshape(Bt, Np, Ep)
    h2 = jnp.maximum(
        jnp.einsum("bij,bje->bie", a, hw2,
                   preferred_element_type=jnp.float32), 0.0)     # (Bt, Np, Ep) f32

    # ---- pool_from_graph: mean over real nodes -> lane-dense (Bt, Ep) slab ----
    # (padded node rows are exactly zero, so the sum over Np is the sum over N)
    out_ref[...] = jnp.sum(h2, axis=1) * inv_n


def graph_encoder_forward(adj, feats, w1, w2, *, block_b=8):
    """BaseGraphEncoder.forward: repr = gnn(g); return pool_from_graph(g, repr)."""
    B, N, _ = adj.shape
    F = feats.shape[-1]
    H = w1.shape[-1]
    E = w2.shape[-1]

    # Padded (TPU-friendly) dims. Zero padding is exact for these ops.
    Np = _round_up(N, 16)            # bf16 sublane packing
    Fp = _round_up(F, 128)           # lane axis
    Hp = _round_up(H, 128)
    Ep = _round_up(E, 128)
    Bt = min(block_b, B)             # graphs per grid step
    Bp = _round_up(B, Bt)

    adj_p = jnp.zeros((Bp, Np, Np), jnp.float32).at[:B, :N, :N].set(adj)
    x_p = jnp.zeros((Bp, Np, Fp), jnp.float32).at[:B, :N, :F].set(feats)
    w1_p = jnp.zeros((Fp, Hp), jnp.float32).at[:F, :H].set(w1)
    w2_p = jnp.zeros((Hp, Ep), jnp.float32).at[:H, :E].set(w2)

    # bf16 inputs, f32 accumulation inside the kernel.
    adj_b = adj_p.astype(jnp.bfloat16)
    x_b = x_p.astype(jnp.bfloat16)
    w1_b = w1_p.astype(jnp.bfloat16)
    w2_b = w2_p.astype(jnp.bfloat16)

    inv_n = 1.0 / float(N)           # static real node count (all graphs dense)

    kernel = functools.partial(_graph_encoder_kernel, inv_n=inv_n)

    grid_len = Bp // Bt
    # Advisory hint for the XLA scheduler around the custom call.
    flops = 2 * Bp * Np * (Fp * Hp + Np * Hp + Hp * Ep + Np * Ep)
    bytes_accessed = 2 * (adj_b.size + x_b.size + w1_b.size + w2_b.size) + 4 * Bp * Ep

    out = pl.pallas_call(
        kernel,
        out_shape=jax.ShapeDtypeStruct((Bp, Ep), jnp.float32),
        grid_spec=pl.GridSpec(
            grid=(grid_len,),
            in_specs=[
                pl.BlockSpec((Bt, Np, Np), lambda b: (b, 0, 0)),  # adjacency
                pl.BlockSpec((Bt, Np, Fp), lambda b: (b, 0, 0)),  # node features
                pl.BlockSpec((Fp, Hp), lambda b: (0, 0)),         # W1 (resident)
                pl.BlockSpec((Hp, Ep), lambda b: (0, 0)),         # W2 (resident)
            ],
            out_specs=pl.BlockSpec((Bt, Ep), lambda b: (b, 0)),   # lane-dense
        ),
        compiler_params=pltpu.CompilerParams(
            dimension_semantics=("parallel",)),
        cost_estimate=pl.CostEstimate(
            flops=flops, transcendentals=0, bytes_accessed=bytes_accessed),
    )(adj_b, x_b, w1_b, w2_b)

    return out[:B, :E]


def _reference(adj, feats, w1, w2):
    h1 = jax.nn.relu(jnp.einsum("bnm,bmf->bnf", adj, feats @ w1))
    h2 = jax.nn.relu(jnp.einsum("bnm,bmf->bnf", adj, h1 @ w2))
    return h2.mean(axis=1)


def _bf16_roundtrip(x):
    return x.astype(jnp.bfloat16).astype(jnp.float32)


if __name__ == "__main__":
    # Small shapes; B chosen so the batched grid has length 2 (feeds 2 TCs on v7x).
    B, N, F, H, EMB = 16, 16, 32, 32, 32

    key = jax.random.PRNGKey(0)
    k_adj, k_x, k_w1, k_w2 = jax.random.split(key, 4)

    # Random symmetric graph -> row-normalized adjacency with self-loops.
    raw = jax.random.uniform(k_adj, (B, N, N))
    adj_bin = ((raw + jnp.transpose(raw, (0, 2, 1))) > 1.0).astype(jnp.float32)
    adj_bin = adj_bin + jnp.eye(N, dtype=jnp.float32)[None]
    adj = adj_bin / jnp.sum(adj_bin, axis=-1, keepdims=True)

    feats = jax.random.normal(k_x, (B, N, F), dtype=jnp.float32)

    # Deterministic synthetic GNN parameters (Glorot-ish scale).
    w1 = jax.random.normal(k_w1, (F, H), dtype=jnp.float32) * (1.0 / jnp.sqrt(F))
    w2 = jax.random.normal(k_w2, (H, EMB), dtype=jnp.float32) * (1.0 / jnp.sqrt(H))

    out = graph_encoder_forward(adj, feats, w1, w2)
    out = jax.block_until_ready(out)

    # Reference on the same bf16-rounded inputs (isolates intermediate rounding).
    ref = _reference(_bf16_roundtrip(adj), _bf16_roundtrip(feats),
                     _bf16_roundtrip(w1), _bf16_roundtrip(w2))

    assert out.shape == (B, EMB)
    assert jnp.allclose(out, ref, atol=2e-2, rtol=2e-2), (
        f"max abs diff {jnp.max(jnp.abs(out - ref))}")

    print("KERNEL_OK")
</pallas_src>

<mosaic_0001>
module attributes {stable_mosaic.version = 11 : i64} {
  func.func @_graph_encoder_kernel(%arg0: i32, %arg1: memref<8x16x16xbf16, #tpu.memory_space<vmem>>, %arg2: memref<8x16x128xbf16, #tpu.memory_space<vmem>>, %arg3: memref<128x128xbf16, #tpu.memory_space<vmem>>, %arg4: memref<128x128xbf16, #tpu.memory_space<vmem>>, %arg5: memref<8x128xf32, #tpu.memory_space<vmem>>) attributes {dimension_semantics = [#tpu.dimension_semantics<parallel>], iteration_bounds = array<i64: 2>, scalar_prefetch = 0 : i64, scratch_operands = 0 : i64, tpu.core_type = #tpu.core_type<tc>, window_params = [{transform_indices = @transform_0, window_bounds = array<i64: 8, 16, 16>}, {transform_indices = @transform_1, window_bounds = array<i64: 8, 16, 128>}, {pipeline_mode = #tpu.pipeline_mode<synchronous>, transform_indices = @transform_2, window_bounds = array<i64: 128, 128>}, {pipeline_mode = #tpu.pipeline_mode<synchronous>, transform_indices = @transform_3, window_bounds = array<i64: 128, 128>}, {transform_indices = @transform_4, window_bounds = array<i64: 8, 128>}]} {
    %c0 = arith.constant 0 : index
    %c0_0 = arith.constant 0 : index
    %c0_1 = arith.constant 0 : index
    %0 = vector.load %arg1[%c0, %c0_0, %c0_1] : memref<8x16x16xbf16, #tpu.memory_space<vmem>>, vector<8x16x16xbf16>
    %c0_2 = arith.constant 0 : index
    %c0_3 = arith.constant 0 : index
    %c0_4 = arith.constant 0 : index
    %1 = vector.load %arg2[%c0_2, %c0_3, %c0_4] : memref<8x16x128xbf16, #tpu.memory_space<vmem>>, vector<8x16x128xbf16>
    %c0_5 = arith.constant 0 : index
    %c0_6 = arith.constant 0 : index
    %2 = vector.load %arg3[%c0_5, %c0_6] : memref<128x128xbf16, #tpu.memory_space<vmem>>, vector<128x128xbf16>
    %c0_7 = arith.constant 0 : index
    %c0_8 = arith.constant 0 : index
    %3 = vector.load %arg4[%c0_7, %c0_8] : memref<128x128xbf16, #tpu.memory_space<vmem>>, vector<128x128xbf16>
    %4 = vector.shape_cast %1 : vector<8x16x128xbf16> to vector<128x128xbf16>
    %cst = arith.constant dense<0.000000e+00> : vector<128x128xf32>
    %5 = tpu.matmul %4, %2, %cst {dimension_numbers = #tpu.dot_dimension_numbers<[1], [0], [0], [1], [0, 0, 1, 1], [], []>} : vector<128x128xbf16>, vector<128x128xbf16>, vector<128x128xf32> -> vector<128x128xf32>
    %6 = arith.truncf %5 : vector<128x128xf32> to vector<128x128xbf16>
    %7 = vector.shape_cast %6 : vector<128x128xbf16> to vector<8x16x128xbf16>
    "tpu.trace_start"() <{level = 10 : i32, message = "bij,bjh->bih"}> : () -> ()
    %cst_9 = arith.constant dense<0.000000e+00> : vector<8x16x128xf32>
    %8 = tpu.matmul %0, %7, %cst_9 {dimension_numbers = #tpu.dot_dimension_numbers<[2], [1], [1], [2], [0, 0, 0, 1, 1, 2], [0], [0]>} : vector<8x16x16xbf16>, vector<8x16x128xbf16>, vector<8x16x128xf32> -> vector<8x16x128xf32>
    "tpu.trace_stop"() : () -> ()
    %cst_10 = arith.constant 0.000000e+00 : f32
    %9 = vector.broadcast %cst_10 : f32 to vector<8x16x128xf32>
    %10 = arith.maximumf %8, %9 : vector<8x16x128xf32>
    %11 = arith.truncf %10 : vector<8x16x128xf32> to vector<8x16x128xbf16>
    %12 = vector.shape_cast %11 : vector<8x16x128xbf16> to vector<128x128xbf16>
    %cst_11 = arith.constant dense<0.000000e+00> : vector<128x128xf32>
    %13 = tpu.matmul %12, %3, %cst_11 {dimension_numbers = #tpu.dot_dimension_numbers<[1], [0], [0], [1], [0, 0, 1, 1], [], []>} : vector<128x128xbf16>, vector<128x128xbf16>, vector<128x128xf32> -> vector<128x128xf32>
    %14 = arith.truncf %13 : vector<128x128xf32> to vector<128x128xbf16>
    %15 = vector.shape_cast %14 : vector<128x128xbf16> to vector<8x16x128xbf16>
    "tpu.trace_start"() <{level = 10 : i32, message = "bij,bje->bie"}> : () -> ()
    %cst_12 = arith.constant dense<0.000000e+00> : vector<8x16x128xf32>
    %16 = tpu.matmul %0, %15, %cst_12 {dimension_numbers = #tpu.dot_dimension_numbers<[2], [1], [1], [2], [0, 0, 0, 1, 1, 2], [0], [0]>} : vector<8x16x16xbf16>, vector<8x16x128xbf16>, vector<8x16x128xf32> -> vector<8x16x128xf32>
    "tpu.trace_stop"() : () -> ()
    %cst_13 = arith.constant 0.000000e+00 : f32
    %17 = vector.broadcast %cst_13 : f32 to vector<8x16x128xf32>
    %18 = arith.maximumf %16, %17 : vector<8x16x128xf32>
    %cst_14 = arith.constant dense<0.000000e+00> : vector<8x128xf32>
    %19 = vector.multi_reduction <add>, %18, %cst_14 [1] : vector<8x16x128xf32> to vector<8x128xf32>
    %cst_15 = arith.constant 6.250000e-02 : f32
    %20 = vector.broadcast %cst_15 : f32 to vector<8x128xf32>
    %21 = arith.mulf %19, %20 : vector<8x128xf32>
    %c0_16 = arith.constant 0 : index
    %c0_17 = arith.constant 0 : index
    %22 = vector.load %arg5[%c0_16, %c0_17] : memref<8x128xf32, #tpu.memory_space<vmem>>, vector<8x128xf32>
    tpu.vector_store %arg5[%c0_16, %c0_17], %21 {strides = array<i32>} : memref<8x128xf32, #tpu.memory_space<vmem>>, vector<8x128xf32>,
    return
  }
  func.func @transform_0(%arg0: i32) -> (i32, i32, i32) {
    %c0_i32 = arith.constant 0 : i32
    %c0_i32_0 = arith.constant 0 : i32
    %c0_i32_1 = arith.constant 0 : i32
    return %arg0, %c0_i32, %c0_i32_0 : i32, i32, i32
  }
  func.func @transform_1(%arg0: i32) -> (i32, i32, i32) {
    %c0_i32 = arith.constant 0 : i32
    %c0_i32_0 = arith.constant 0 : i32
    %c0_i32_1 = arith.constant 0 : i32
    return %arg0, %c0_i32, %c0_i32_0 : i32, i32, i32
  }
  func.func @transform_2(%arg0: i32) -> (i32, i32) {
    %c0_i32 = arith.constant 0 : i32
    %c0_i32_0 = arith.constant 0 : i32
    %c0_i32_1 = arith.constant 0 : i32
    return %c0_i32, %c0_i32_0 : i32, i32
  }
  func.func @transform_3(%arg0: i32) -> (i32, i32) {
    %c0_i32 = arith.constant 0 : i32
    %c0_i32_0 = arith.constant 0 : i32
    %c0_i32_1 = arith.constant 0 : i32
    return %c0_i32, %c0_i32_0 : i32, i32
  }
  func.func @transform_4(%arg0: i32) -> (i32, i32) {
    %c0_i32 = arith.constant 0 : i32
    %c0_i32_0 = arith.constant 0 : i32
    return %arg0, %c0_i32 : i32, i32
  }
}

</mosaic_0001>

<bundles_post_ra>
// kernel: tpu_custom_call.1
= control target key start
LH: loop header
LB: loop body
LE: loop exit
PB: predicated region body
PF: predicated region fallthrough
CT: control target
= control target key end

     0   :  { %s2727_s0 = inlined_call_operand.hbm [shape: bf16[16,16,16], index: 0, kind: input, shape index: {}]   ;;  %s2728_s1 = inlined_call_operand.hbm [shape: bf16[16,16,128], index: 1, kind: input, shape index: {}]   ;;  %s2729_s2 = inlined_call_operand.hbm [shape: bf16[128,128], index: 2, kind: input, shape index: {}]   ;;  %s2730_s3 = inlined_call_operand.hbm [shape: bf16[128,128], index: 3, kind: input, shape index: {}]   ;;  %s2731_s4 = inlined_call_operand.hbm [shape: f32[16,128], index: 4, kind: output, shape index: {}]  }
   0x1   :  { %2739 = sst [smem:[#allocation16_spill]] %s2727_s0 }
   0x2   :  { %9 = vsyncpa [#allocation3], 0 }
   0x3   :  { %11 = vsyncpa [#allocation3 + $0x1], 0 }
   0x4   :  { %12 = vsyncpa [#allocation6], 0 }
   0x5   :  { %14 = vsyncpa [#allocation6 + $0x1], 0 }
   0x6   :  { %15 = vsyncpa [#allocation9], 0 }
   0x7   :  { %16 = vsyncpa [#allocation4], 0 }
   0x8   :  { %18 = vsyncpa [#allocation4 + $0x1], 0  ;;  %s2320_s15 = smov 0   ;;  %s2322_s16 = smov 0  }
   0x9   :  { %s2324_s17 = smov 0   ;;  %s2326_s18 = smov 0  }
   0xa LB: > { %s2341_s19 = sadd.s32 4294967295, %s2284_s18   ;;  %s1683_s20 = sadd.s32 4294967294, %s2284_s18   ;;  %s2284_s18 = sphi %s2326_s18, %s2761_s18   ;;  %s2280_s17 = sphi %s2324_s17, %s2760_s17   ;;  %s2276_s16 = sphi %s2322_s16, %s2759_s16   ;;  %s2272_s15 = sphi %s2320_s15, %s2758_s15  }
   0xb   : > { %p44_p0 = scmp.ne.s32.totalorder %s2276_s16, %s2272_s15  ;;  %p2732_p1 = scmp.eq.s32.totalorder %s2341_s19, 0 }
   0xc   : > { %p142_p3 = scmp.eq.s32.totalorder %s1683_s20, 1  ;;  %p1684_p5 = scmp.ge.s32.totalorder %s2284_s18, 1 }
   0xd   : > { %p2350_p4 = por %p2732_p1, %p44_p0  ;;  %p149_p7 = scmp.lt.s32.totalorder %s2284_s18, 3 }
   0xe   : > { %p2355_p6 = por %p142_p3, %p44_p0  ;;  %s2286_s24 = smov [#allocation7]  }
   0xf   : > { %s2740_s21 = scalar_select %p2350_p4, 1, 0 }
  0x10   : > { %s2741_s22 = scalar_select %p2355_p6, 1, 0 }
  0x11   : > { %p2360_p8 = pnand %p1684_p5, %p149_p7  ;;  %s161_s25 = sshll.u32 %s2286_s24, 4  ;;  %s2364_s25 = int_to_ptr.vmem [resolvable:$true] %s161_s25 }
  0x12   : > { %s2287_s27 = smov [#allocation8]   ;;  %s2090_s5 = scalar_lea.hbm %s2729_s2, 1024 }
  0x13   : > { %p1996_p9 = pneg %p2360_p8  ;;  %s174_s28 = sshll.u32 %s2287_s27, 4  ;;  %s2375_s28 = int_to_ptr.vmem [resolvable:$true] %s174_s28 }
  0x14   : > { %p2091_p12 = scmp.ne.s32.totalorder %s2729_s2, %s2090_s5  ;;  %p2097_p5 = scmp.lt.u32.totalorder %s2090_s5, %s2729_s2 }
  0x15   : > { %p2371_p11 = pnand %p1996_p9, %p2732_p1 }
  0x17   : > { %p2092_p13 = pneg %p2371_p11 }
  0x19   : > { %p2093_p0 = pnand %p2092_p13, %p2091_p12 }
  0x1b   : > { %p2094_p3 = pneg %p2093_p0 }
  0x1d   : > { %p2099_p7 = pnand %p2097_p5, %p2094_p3 }
  0x1f   : > { %2102 = shalt.err (!%p2099_p7)
}
  0x20   : > { %s2103_s10 = scalar_lea.vmem %s2364_s25, 1024  ;;  %p2111_p2 = scmp.lt.s32.totalorder %s2364_s25, %s2364_s25 }
  0x21   : > { %p2104_p9 = scmp.ne.s32.totalorder %s2364_s25, %s2103_s10  ;;  %p2112_p12 = scmp.lt.s32.totalorder %s2103_s10, %s2103_s10 }
  0x23   : > { %p2106_p10 = pnand %p2104_p9, %p2092_p13  ;;  %p2113_p0 = por %p2112_p12, %p2111_p2 }
  0x25   : > { %p2107_p1 = pneg %p2106_p10 }
  0x27   : > { %p2114_p6 = pnand %p2113_p0, %p2107_p1 }
  0x29   : > { %2117 = shalt.err (!%p2114_p6)
}
  0x2a   : > { %s2733_s11 = smov 64   ;;  %s2735_s12 = smov 4  }
  0x2b   : > { %1999 = dma.hbm_to_vmem [thread:$0]  (!%p2371_p11), %s2729_s2, 1024, %s2364_s25, [#allocation6], %s2733_s11, %s2733_s11, %s2735_s12  }
  0x2c   : > { %s2118_s27 = scalar_lea.hbm %s2730_s3, 1024 }
  0x2d   : > { %p2119_p1 = scmp.ne.s32.totalorder %s2730_s3, %s2118_s27  ;;  %p2125_p10 = scmp.lt.u32.totalorder %s2118_s27, %s2730_s3 }
  0x2f   : > { %p2121_p2 = pnand %p2119_p1, %p2092_p13 }
  0x31   : > { %p2122_p6 = pneg %p2121_p2 }
  0x33   : > { %p2127_p3 = pnand %p2125_p10, %p2122_p6 }
  0x35   : > { %2130 = shalt.err (!%p2127_p3)
}
  0x36   : > { %s2131_s25 = scalar_lea.vmem %s2375_s28, 1024  ;;  %p2139_p12 = scmp.lt.s32.totalorder %s2375_s28, %s2375_s28 }
  0x37   : > { %p2132_p5 = scmp.ne.s32.totalorder %s2375_s28, %s2131_s25  ;;  %p2140_p0 = scmp.lt.s32.totalorder %s2131_s25, %s2131_s25 }
  0x39   : > { %p2134_p7 = pnand %p2132_p5, %p2092_p13  ;;  %p2141_p1 = por %p2140_p0, %p2139_p12 }
  0x3b   : > { %p2135_p9 = pneg %p2134_p7 }
  0x3d   : > { %p2142_p2 = pnand %p2141_p1, %p2135_p9 }
  0x3f   : > { %2145 = shalt.err (!%p2142_p2)
}
  0x40   : > { %2002 = dma.hbm_to_vmem [thread:$0]  (!%p2371_p11), %s2730_s3, 1024, %s2375_s28, [#allocation9], %s2733_s11, %s2733_s11, %s2735_s12  }
  0x41   : > { %s2436_s26 = sadd.s32 1, %s2284_s18   ;;  %s31_s9 = sadd.s32 1, %s2280_s17 }
  0x42   : > { %s28_s10 = ssub.s32 %s2284_s18, %s2436_s26  ;;  %p38_p13 = scmp.ne.s32.totalorder %s2280_s17, %s2276_s16 }
  0x43   : > { %p29_p6 = scmp.eq.s32.totalorder %s28_s10, 0  ;;  %p39_p10 = scmp.eq.s32.totalorder %s2284_s18, 0 }
  0x44   : > { %p2744_p3 = scmp.eq.s32.totalorder %s2341_s19, 1  ;;  %p2016_p7 = scmp.lt.s32.totalorder %s2284_s18, 2 }
  0x45   : > { %s2452_s14 = scalar_select %p29_p6, %s2280_s17, %s31_s9  }
  0x46   : > { %p2446_p5 = por %p2744_p3, %p38_p13  ;;  %p40_p9 = por %p39_p10, %p38_p13 }
  0x47   : > { %s188_s20 = sand.u32 1, %s2280_s17   ;;  %s1755_s28 = sshll.u32 %s2284_s18, 10 }
  0x48   : > { %s2745_s13 = scalar_select %p2446_p5, 1, 0 }
  0x49   : > { %s1688_s24 = sshll.u32 %s188_s20, 6  ;;  %s2746_s0 = sld [smem:[#allocation16_spill]] }
  0x4a   : > { %s192_s5 = scalar_lea.vmem [#allocation2], %s1688_s24  ;;  %p2463_p11 = pnand %p2016_p7, %p40_p9 }
  0x4b   : > { %s200_s6 = sshll.u32 %s192_s5, 4  ;;  %s2470_s9 = scalar_lea.hbm %s2728_s1, %s1755_s28  ;;  %s2461_s6 = int_to_ptr.vmem [resolvable:$true] %s200_s6 }
  0x4c   : > { %s214_s10 = scalar_lea.vmem [#allocation5], %s1688_s24  ;;  %s2474_s29 = scalar_lea.sflag [#allocation3], %s188_s20 }
  0x4d   : > { %s2472_s27 = sshll.u32 %s214_s10, 4  ;;  %p2148_p0 = pneg %p2463_p11  ;;  %s2506_s27 = int_to_ptr.vmem [resolvable:$true] %s2472_s27 }
  0x4f   : > { %s2459_s30 = scalar_lea.hbm %s2746_s0, %s1755_s28  ;;  %s2151_s7 = scalar_lea.hbm %s2746_s0, 2048 }
  0x50   : > { %s2146_s5 = scalar_lea.hbm %s2459_s30, 1024  ;;  %p2152_p13 = scmp.lt.u32.totalorder %s2459_s30, %s2746_s0 }
  0x51   : > { %p2147_p12 = scmp.ne.s32.totalorder %s2459_s30, %s2146_s5  ;;  %p2153_p6 = scmp.lt.u32.totalorder %s2151_s7, %s2146_s5 }
  0x52   : > { %p2155_p3 = scmp.lt.u32.totalorder %s2146_s5, %s2459_s30 }
  0x53   : > { %p2149_p1 = pnand %p2148_p0, %p2147_p12  ;;  %p2154_p10 = por %p2153_p6, %p2152_p13 }
  0x55   : > { %p2150_p2 = pneg %p2149_p1  ;;  %p2156_p7 = por %p2155_p3, %p2154_p10 }
  0x57   : > { %p2157_p9 = pnand %p2156_p7, %p2150_p2 }
  0x59   : > { %2160 = shalt.err (!%p2157_p9)
}
  0x5a   : > { %s2161_s20 = scalar_lea.vmem %s2461_s6, 1024  ;;  %s2290_s11 = smov [#allocation2]  }
  0x5b   : > { %p2162_p12 = scmp.ne.s32.totalorder %s2461_s6, %s2161_s20  ;;  %s2166_s12 = sshll.u32 %s2290_s11, 4  ;;  %s2167_s12 = int_to_ptr.vmem [resolvable:$false] %s2166_s12 }
  0x5c   : > { %s2168_s24 = scalar_lea.vmem %s2167_s12, 2048  ;;  %p2169_p4 = scmp.lt.s32.totalorder %s2461_s6, %s2167_s12 }
  0x5d   : > { %p2164_p1 = pnand %p2162_p12, %p2148_p0  ;;  %p2170_p13 = scmp.lt.s32.totalorder %s2168_s24, %s2161_s20 }
  0x5f   : > { %p2165_p5 = pneg %p2164_p1  ;;  %p2171_p6 = por %p2170_p13, %p2169_p4 }
  0x61   : > { %p2172_p10 = pnand %p2171_p6, %p2165_p5 }
  0x63   : > { %2175 = shalt.err (!%p2172_p10)
}
  0x64   : > { %s2748_s10 = smov 4   ;;  %s2749_s5 = smov 64  }
  0x65   : > { %2006 = dma.hbm_to_vmem [thread:$0]  (!%p2463_p11), %s2459_s30, 1024, %s2461_s6, %s2474_s29, %s2749_s5, %s2749_s5, %s2748_s10  }
  0x66   : > { %s210_s7 = sand.u32 1, %s2284_s18   ;;  %s2176_s28 = scalar_lea.hbm %s2470_s9, 1024 }
  0x67   : > { %s2509_s8 = scalar_lea.sflag [#allocation6], %s210_s7  ;;  %p2177_p4 = scmp.ne.s32.totalorder %s2470_s9, %s2176_s28 }
  0x68   : > { %s2181_s12 = scalar_lea.hbm %s2728_s1, 2048  ;;  %p2182_p3 = scmp.lt.u32.totalorder %s2470_s9, %s2728_s1 }
  0x69   : > { %p2179_p5 = pnand %p2177_p4, %p2148_p0  ;;  %p2183_p7 = scmp.lt.u32.totalorder %s2181_s12, %s2176_s28 }
  0x6a   : > { %p2185_p12 = scmp.lt.u32.totalorder %s2176_s28, %s2470_s9 }
  0x6b   : > { %p2180_p2 = pneg %p2179_p5  ;;  %p2184_p9 = por %p2183_p7, %p2182_p3 }
  0x6d   : > { %p2186_p1 = por %p2185_p12, %p2184_p9 }
  0x6f   : > { %p2187_p13 = pnand %p2186_p1, %p2180_p2 }
  0x71   : > { %2190 = shalt.err (!%p2187_p13)
}
  0x72   : > { %s2191_s30 = scalar_lea.vmem %s2506_s27, 1024  ;;  %s2291_s6 = smov [#allocation5]  }
  0x73   : > { %p2192_p6 = scmp.ne.s32.totalorder %s2506_s27, %s2191_s30  ;;  %s2196_s29 = sshll.u32 %s2291_s6, 4  ;;  %s2197_s29 = int_to_ptr.vmem [resolvable:$false] %s2196_s29 }
  0x74   : > { %s2198_s0 = scalar_lea.vmem %s2197_s29, 2048  ;;  %p2199_p5 = scmp.lt.s32.totalorder %s2506_s27, %s2197_s29 }
  0x75   : > { %p2194_p10 = pnand %p2192_p6, %p2148_p0  ;;  %p2200_p3 = scmp.lt.s32.totalorder %s2198_s0, %s2191_s30 }
  0x77   : > { %p2195_p4 = pneg %p2194_p10  ;;  %p2201_p7 = por %p2200_p3, %p2199_p5 }
  0x79   : > { %p2202_p9 = pnand %p2201_p7, %p2195_p4 }
  0x7b   : > { %2205 = shalt.err (!%p2202_p9)
}
  0x7c   : > { %2009 = dma.hbm_to_vmem [thread:$0]  (!%p2463_p11), %s2470_s9, 1024, %s2506_s27, %s2509_s8, %s2749_s5, %s2749_s5, %s2748_s10  }
  0x7d   : > { %234 = sbr.rel (%p2360_p8) target bundleno = 1137 (0x471), region = 36  ;;  %s2541_s7 = sand.u32 (!%p2360_p8), 1, %s2276_s16  }
  0x7e   : > { %s1697_s28 = sshll.u32 (!%p2360_p8), %s2541_s7, 6  ;;  %s237_s20 = scalar_lea.sflag (!%p2360_p8), [#allocation3], %s2541_s7 }
  0x7f   : > { %s2545_s11 = scalar_lea.vmem (!%p2360_p8), [#allocation2], %s1697_s28  ;;  %p2750_p0 = scmp.ne.s32.totalorder (!%p2360_p8), %s2740_s21, 0 }
  0x84   : > { %2251 = dma.done.wait (%p2750_p0), %s237_s20, 1024  }
  0x85   : > { %2253 = vsyncadd (%p2750_p0), %s237_s20, 4294966272  ;;  %s245_s25 = sand.u32 1, %s2341_s19   ;;  %s2552_s9 = scalar_lea.vmem [#allocation5], %s1697_s28 }
  0x86   : > { %s246_s23 = scalar_lea.sflag [#allocation6], %s245_s25 }
  0x87   : > { %2255 = dma.done.wait (%p2750_p0), %s246_s23, 1024  }
  0x88   : > { %2257 = vsyncadd (%p2750_p0), %s246_s23, 4294966272  ;;  %p2751_p8 = scmp.eq.s32.totalorder %s2341_s19, 0 }
  0x8a   : > { %2259 = dma.done.wait (%p2751_p8), [#allocation6], 1024   ;;  %p2752_p11 = pmov %p2751_p8 }
  0x8b   : > { %p2753_p2 = pmov %p2751_p8 }
  0x8c   : > { %2261 = vsyncadd (%p2752_p11), [#allocation6], 4294966272 }
  0x8d   : > { %2263 = dma.done.wait (%p2753_p2), [#allocation9], 1024   ;;  %p2754_p12 = pmov %p2753_p2 }
  0x8e   : > { %v2058_v0 = vld [vmem:[#allocation7] sm:$0xff]   ;;  %v2059_v1 = vld [vmem:[#allocation7 + $0x8] sm:$0xff]   ;;  %v2060_v2 = vld [vmem:[#allocation7 + $0x10] sm:$0xff]   ;;  %v2292_v16 = vmov 0.0   ;;  %vm2293_vm0 = vmmov 0   ;;  %vm560_vm1 = vcmask 130048  }
  0x8f   : > { %2265 = vsyncadd (%p2754_p12), [#allocation9], 4294966272  ;;  %1822 = vmatprep.subr.bf16.mxu0 %v2058_v0  ;;  %v2061_v3 = vld [vmem:[#allocation7 + $0x18] sm:$0xff]   ;;  %v2066_v4 = vld [vmem:[%s2552_s9] sm:$0xff]   ;;  %1854 = vmatprep.subr.bf16.mxu1 %v2292_v16  ;;  %vm1541_vm2 = vcmask 1041409   ;;  %vm1543_vm3 = vcmask 1042434  }
  0x90   : > { %1823 = vmatpush3.bf16.msra.mxu0 %v2058_v0  ;;  %1838 = vmatprep.mubr.bf16.mxu0 %v2066_v4  ;;  %v2062_v5 = vld [vmem:[#allocation7 + $0x20] sm:$0xff]   ;;  %v2063_v6 = vld [vmem:[#allocation7 + $0x28] sm:$0xff]   ;;  %v2064_v7 = vld [vmem:[#allocation7 + $0x30] sm:$0xff]   ;;  %vm1545_vm4 = vcmask 1043459   ;;  %vm1547_vm5 = vcmask 1044484   ;;  %vm1549_vm6 = vcmask 1045509  }
  0x91   : > { %1824 = vmatprep.subr.bf16.mxu0 %v2059_v1  ;;  %v2065_v8 = vld [vmem:[#allocation7 + $0x38] sm:$0xff]   ;;  %v2067_v9 = vld [vmem:[%s2552_s9 + $0x8] sm:$0xff]   ;;  %v2068_v10 = vld [vmem:[%s2552_s9 + $0x10] sm:$0xff]   ;;  %1856 = vmatprep.mubr.msk.bf16.mxu1 %vm2293_vm0, %v2292_v16  ;;  %s1701_s21 = sshll.u32 %s2541_s7, 3  ;;  %vm1551_vm7 = vcmask 1046534   ;;  %s1751_s27 = sshll.u32 %s2341_s19, 7 }
  0x92   : > { %v2069_v11 = vld [vmem:[%s2552_s9 + $0x18] sm:$0xff]   ;;  %v2070_v12 = vld [vmem:[%s2552_s9 + $0x20] sm:$0xff]   ;;  %v2071_v13 = vld [vmem:[%s2552_s9 + $0x28] sm:$0xff]   ;;  %s286_s10 = scalar_lea.vmem [#allocation10], %s1701_s21  ;;  %vm1553_vm8 = vcmask 1047559   ;;  %s2683_s24 = scalar_lea.hbm %s2731_s4, %s1751_s27 }
  0x93   : > { %v2072_v14 = vld [vmem:[%s2552_s9 + $0x30] sm:$0xff]   ;;  %v2073_v15 = vld [vmem:[%s2552_s9 + $0x38] sm:$0xff]   ;;  %v2082_v17 = vld [vmem:[#allocation8] sm:$0xff]   ;;  %s1571_s5 = sshll.u32 %s286_s10, 4  ;;  %s1558_s30 = scalar_lea.sflag [#allocation4], %s2541_s7  ;;  %s2685_s5 = int_to_ptr.vmem [resolvable:$true] %s1571_s5 }
  0x94   : > { %1825 = vmatpush3.bf16.msra.mxu0 %v2059_v1  ;;  %v2083_v18 = vld [vmem:[#allocation8 + $0x8] sm:$0xff]   ;;  %v2084_v19 = vld [vmem:[#allocation8 + $0x10] sm:$0xff]   ;;  %v2085_v20 = vld [vmem:[#allocation8 + $0x18] sm:$0xff]   ;;  %s2206_s19 = scalar_lea.vmem %s2685_s5, 128  ;;  %p2755_p13 = scmp.ne.s32.totalorder %s2745_s13, 0 }
  0x95   : > { %1826 = vmatprep.subr.bf16.mxu0 %v2060_v2  ;;  %v2086_v21 = vld [vmem:[#allocation8 + $0x20] sm:$0xff]   ;;  %v2587_v35 = vld [vmem:[%s2545_s11 + $0x8] sm:$0xff]   ;;  %v2595_v42 = vld [vmem:[%s2545_s11 + $0x10] sm:$0xff]   ;;  %p2207_p1 = scmp.ne.s32.totalorder %s2685_s5, %s2206_s19  ;;  %s2294_s6 = smov [#allocation10]  }
  0x96   : > { %v2578_v28 = vld [vmem:[%s2545_s11] sm:$0xff]   ;;  %v2603_v49 = vld [vmem:[%s2545_s11 + $0x18] sm:$0xff]   ;;  %v2619_v51 = vld [vmem:[%s2545_s11 + $0x28] sm:$0xff]   ;;  %s2210_s29 = sshll.u32 %s2294_s6, 4  ;;  %s2211_s29 = int_to_ptr.vmem [resolvable:$false] %s2210_s29 }
  0x97   : > { %v2611_v50 = vld [vmem:[%s2545_s11 + $0x20] sm:$0xff]   ;;  %v2627_v52 = vld [vmem:[%s2545_s11 + $0x30] sm:$0xff]   ;;  %v2635_v53 = vld [vmem:[%s2545_s11 + $0x38] sm:$0xff]   ;;  %p2208_p6 = pnand %p2207_p1, %p2755_p13  ;;  %s2212_s0 = scalar_lea.vmem %s2211_s29, 256 }
  0x98   : > { %1827 = vmatpush3.bf16.msra.mxu0 %v2060_v2  ;;  %v2087_v54 = vld [vmem:[#allocation8 + $0x28] sm:$0xff]   ;;  %v2088_v55 = vld [vmem:[#allocation8 + $0x30] sm:$0xff]   ;;  %v2089_v56 = vld [vmem:[#allocation8 + $0x38] sm:$0xff]   ;;  %p2213_p4 = scmp.lt.s32.totalorder %s2685_s5, %s2211_s29  ;;  %p2214_p5 = scmp.lt.s32.totalorder %s2212_s0, %s2206_s19 }
  0x99   : > { %1828 = vmatprep.subr.bf16.mxu0 %v2061_v3  ;;  %p2209_p10 = pneg %p2208_p6 }
  0x9a   : > { %p2215_p3 = por %p2214_p5, %p2213_p4 }
  0x9c   : > { %1829 = vmatpush3.bf16.msra.mxu0 %v2061_v3  ;;  %p2216_p7 = pnand %p2215_p3, %p2209_p10 }
  0x9d   : > { %1830 = vmatprep.subr.bf16.mxu0 %v2062_v5 }
  0xa0   : > { %1831 = vmatpush3.bf16.msra.mxu0 %v2062_v5 }
  0xa1   : > { %1832 = vmatprep.subr.bf16.mxu0 %v2063_v6 }
  0xa4   : > { %1833 = vmatpush3.bf16.msra.mxu0 %v2063_v6 }
  0xa5   : > { %1834 = vmatprep.subr.bf16.mxu0 %v2064_v7 }
  0xa8   : > { %1835 = vmatpush3.bf16.msra.mxu0 %v2064_v7 }
  0xa9   : > { %1836 = vmatprep.subr.bf16.mxu0 %v2065_v8 }
  0xac   : > { %1837 = vmatpush3.bf16.msra.mxu0 %v2065_v8 }
  0xad   : > { %1902 = vmatprep.subr.bf16.mxu0 %v2082_v17 }
  0xaf   : > { %1839 = vmatmul.mubr.bf16.vlgmr.msra.gmra.mrb[0].mxu0 %v2067_v9 }
  0xb0   : > { %1842 = vmatprep.mubr.bf16.mxu0 %v2068_v10  ;;  %1903 = vmatpush3.bf16.msra.mxu0 %v2082_v17 }
  0xb1   : > { %1904 = vmatprep.subr.bf16.mxu0 %v2083_v18 }
  0xb4   : > { %1905 = vmatpush3.bf16.msra.mxu0 %v2083_v18 }
  0xb5   : > { %1906 = vmatprep.subr.bf16.mxu0 %v2084_v19 }
  0xb7   : > { %1843 = vmatmul.mubr.bf16.gmra.mrb[4].mxu0 %v2069_v11 }
  0xb8   : > { %1846 = vmatprep.mubr.bf16.mxu0 %v2070_v12  ;;  %1907 = vmatpush3.bf16.msra.mxu0 %v2084_v19 }
  0xb9   : > { %1908 = vmatprep.subr.bf16.mxu0 %v2085_v20 }
  0xbc   : > { %1909 = vmatpush3.bf16.msra.mxu0 %v2085_v20 }
  0xbd   : > { %1910 = vmatprep.subr.bf16.mxu0 %v2086_v21 }
  0xbf   : > { %1847 = vmatmul.mubr.bf16.gmra.mrb[8].mxu0 %v2071_v13 }
  0xc0   : > { %1850 = vmatprep.mubr.bf16.mxu0 %v2072_v14  ;;  %1911 = vmatpush3.bf16.msra.mxu0 %v2086_v21 }
  0xc1   : > { %1912 = vmatprep.subr.bf16.mxu0 %v2087_v54 }
  0xc4   : > { %1913 = vmatpush3.bf16.msra.mxu0 %v2087_v54 }
  0xc5   : > { %1914 = vmatprep.subr.bf16.mxu0 %v2088_v55 }
  0xc7   : > { %1851 = vmatmul.mubr.bf16.gmra.mrb[12].mxu0 %v2073_v15 }
  0xc8   : > { %1915 = vmatpush3.bf16.msra.mxu0 %v2088_v55 }
  0xc9   : > { %1916 = vmatprep.subr.bf16.mxu0 %v2089_v56 }
  0xcc   : > { %1917 = vmatpush3.bf16.msra.mxu0 %v2089_v56 }
  0xcd   : > { %1958 = vmatprep.subr.bf16.mxu0 %v2292_v16 }
 0x182   : > { %v1840_v22 = vpop.f32.mrb[0].mxu0 }
 0x183   : > { %v484_v23 = vpop.f32.mrb[1].mxu0 }
 0x184   : > { %v1841_v24 = vpop.f32.mrb[2].mxu0 }
 0x185   : > { %v548_v25 = vpack.c.bf16 %v1841_v24, %v1840_v22  ;;  %v487_v26 = vpop.f32.mrb[3].mxu0 }
 0x186   : > { %v547_v27 = vpack.c.bf16 %v487_v26, %v484_v23 }
 0x188   : > { %1855 = vmatpush3.bf16.msra.mxu1 %v547_v27 }
 0x189   : > { %1860 = vmatprep.subr.bf16.mxu1 %v2292_v16 }
 0x18a   : > { %v1844_v29 = vpop.f32.mrb[4].mxu0 }
 0x18b   : > { %1857 = vmatmul.mubr.msk.bf16.vlgmr.msra.gmra.mrb[0].mxu1 %vm560_vm1, %v2578_v28  ;;  %v500_v30 = vpop.f32.mrb[5].mxu0 }
 0x18c   : > { %1861 = vmatpush3.bf16.msra.mxu1 %v548_v25  ;;  %v1845_v31 = vpop.f32.mrb[6].mxu0  ;;  %1862 = vmatprep.mubr.msk.bf16.mxu1 %vm2293_vm0, %v2292_v16 }
 0x18d   : > { %v550_v32 = vpack.c.bf16 %v1845_v31, %v1844_v29  ;;  %v503_v33 = vpop.f32.mrb[7].mxu0  ;;  %1866 = vmatprep.subr.bf16.mxu1 %v2292_v16 }
 0x18e   : > { %v549_v34 = vpack.c.bf16 %v503_v33, %v500_v30 }
 0x192   : > { %v1848_v36 = vpop.f32.mrb[8].mxu0 }
 0x193   : > { %1863 = vmatmul.mubr.msk.bf16.vlgmr.msra.gmra.mrb[4].mxu1 %vm560_vm1, %v2587_v35  ;;  %v516_v37 = vpop.f32.mrb[9].mxu0 }
 0x194   : > { %1867 = vmatpush3.bf16.msra.mxu1 %v549_v34  ;;  %1868 = vmatprep.mubr.msk.bf16.mxu1 %vm2293_vm0, %v2292_v16  ;;  %v1849_v38 = vpop.f32.mrb[10].mxu0 }
 0x195   : > { %1872 = vmatprep.subr.bf16.mxu1 %v2292_v16  ;;  %v552_v39 = vpack.c.bf16 %v1849_v38, %v1848_v36  ;;  %v519_v40 = vpop.f32.mrb[11].mxu0 }
 0x196   : > { %v551_v41 = vpack.c.bf16 %v519_v40, %v516_v37 }
 0x19a   : > { %v1852_v43 = vpop.f32.mrb[12].mxu0 }
 0x19b   : > { %1869 = vmatmul.mubr.msk.bf16.vlgmr.msra.gmra.mrb[8].mxu1 %vm560_vm1, %v2595_v42  ;;  %v532_v44 = vpop.f32.mrb[13].mxu0 }
 0x19c   : > { %1873 = vmatpush3.bf16.msra.mxu1 %v550_v32  ;;  %1874 = vmatprep.mubr.msk.bf16.mxu1 %vm2293_vm0, %v2292_v16  ;;  %v1853_v45 = vpop.f32.mrb[14].mxu0 }
 0x19d   : > { %1878 = vmatprep.subr.bf16.mxu1 %v2292_v16  ;;  %v554_v46 = vpack.c.bf16 %v1853_v45, %v1852_v43  ;;  %v535_v47 = vpop.f32.mrb[15].mxu0 }
 0x19e   : > { %v553_v48 = vpack.c.bf16 %v535_v47, %v532_v44 }
 0x1a3   : > { %1875 = vmatmul.mubr.msk.bf16.vlgmr.msra.gmra.mrb[12].mxu1 %vm560_vm1, %v2603_v49 }
 0x1a4   : > { %1879 = vmatpush3.bf16.msra.mxu1 %v551_v41  ;;  %1880 = vmatprep.mubr.msk.bf16.mxu1 %vm2293_vm0, %v2292_v16 }
 0x1a5   : > { %1884 = vmatprep.subr.bf16.mxu1 %v2292_v16 }
 0x1ab   : > { %1881 = vmatmul.mubr.msk.bf16.vlgmr.msra.gmra.mrb[16].mxu1 %vm560_vm1, %v2611_v50 }
 0x1ac   : > { %1885 = vmatpush3.bf16.msra.mxu1 %v552_v39  ;;  %1886 = vmatprep.mubr.msk.bf16.mxu1 %vm2293_vm0, %v2292_v16 }
 0x1ad   : > { %1890 = vmatprep.subr.bf16.mxu1 %v2292_v16 }
 0x1b3   : > { %1887 = vmatmul.mubr.msk.bf16.vlgmr.msra.gmra.mrb[20].mxu1 %vm560_vm1, %v2619_v51 }
 0x1b4   : > { %1891 = vmatpush3.bf16.msra.mxu1 %v553_v48  ;;  %1892 = vmatprep.mubr.msk.bf16.mxu1 %vm2293_vm0, %v2292_v16 }
 0x1b5   : > { %1896 = vmatprep.subr.bf16.mxu1 %v2292_v16 }
 0x1bb   : > { %1893 = vmatmul.mubr.msk.bf16.vlgmr.msra.gmra.mrb[24].mxu1 %vm560_vm1, %v2627_v52 }
 0x1bc   : > { %1897 = vmatpush3.bf16.msra.mxu1 %v554_v46  ;;  %1898 = vmatprep.mubr.msk.bf16.mxu1 %vm2293_vm0, %v2292_v16 }
 0x1bd   : > { %1934 = vmatprep.subr.bf16.mxu1 %v2292_v16 }
 0x1c3   : > { %1899 = vmatmul.mubr.msk.bf16.vlgmr.msra.gmra.mrb[28].mxu1 %vm560_vm1, %v2635_v53 }
 0x1c4   : > { %1936 = vmatprep.mubr.msk.bf16.mxu1 %vm2293_vm0, %v2292_v16 }
 0x25e   : > { %v598_v57 = vpop.f32.mrb[0].mxu1 }
 0x25f   : > { %v1858_v58 = vpop.f32.mrb[1].mxu1  ;;  %v948_v60 = vmax.f32 %v598_v57, 0.0 }
 0x260   : > { %v601_v59 = vpop.f32.mrb[2].mxu1 }
 0x261   : > { %v949_v61 = vmax.f32 %v601_v59, 0.0  ;;  %v1859_v62 = vpop.f32.mrb[3].mxu1 }
 0x263   : > { %v964_v63 = vpack.c.bf16 %v949_v61, %v948_v60 }
 0x265   : > { %1918 = vmatprep.mubr.bf16.mxu0 %v964_v63 }
 0x266   : > { %v647_v0 = vpop.f32.mrb[4].mxu1 }
 0x267   : > { %v1864_v1 = vpop.f32.mrb[5].mxu1  ;;  %v950_v3 = vmax.f32 %v647_v0, 0.0 }
 0x268   : > { %v650_v2 = vpop.f32.mrb[6].mxu1 }
 0x269   : > { %v951_v4 = vmax.f32 %v650_v2, 0.0  ;;  %v1865_v5 = vpop.f32.mrb[7].mxu1 }
 0x26b   : > { %v965_v6 = vpack.c.bf16 %v951_v4, %v950_v3 }
 0x26d   : > { %1919 = vmatmul.mubr.bf16.vlgmr.msra.gmra.mrb[16].mxu0 %v965_v6 }
 0x26e   : > { %v696_v7 = vpop.f32.mrb[8].mxu1 }
 0x26f   : > { %v1870_v8 = vpop.f32.mrb[9].mxu1  ;;  %v952_v10 = vmax.f32 %v696_v7, 0.0 }
 0x270   : > { %v699_v9 = vpop.f32.mrb[10].mxu1 }
 0x271   : > { %v953_v11 = vmax.f32 %v699_v9, 0.0  ;;  %v1871_v12 = vpop.f32.mrb[11].mxu1 }
 0x273   : > { %v966_v13 = vpack.c.bf16 %v953_v11, %v952_v10 }
 0x275   : > { %1922 = vmatprep.mubr.bf16.mxu0 %v966_v13 }
 0x276   : > { %v745_v14 = vpop.f32.mrb[12].mxu1 }
 0x277   : > { %v1876_v15 = vpop.f32.mrb[13].mxu1  ;;  %v954_v18 = vmax.f32 %v745_v14, 0.0 }
 0x278   : > { %v748_v17 = vpop.f32.mrb[14].mxu1 }
 0x279   : > { %v955_v19 = vmax.f32 %v748_v17, 0.0  ;;  %v1877_v20 = vpop.f32.mrb[15].mxu1 }
 0x27b   : > { %v967_v21 = vpack.c.bf16 %v955_v19, %v954_v18 }
 0x27d   : > { %1923 = vmatmul.mubr.bf16.gmra.mrb[20].mxu0 %v967_v21 }
 0x27e   : > { %v794_v22 = vpop.f32.mrb[16].mxu1 }
 0x27f   : > { %v1882_v23 = vpop.f32.mrb[17].mxu1  ;;  %v956_v25 = vmax.f32 %v794_v22, 0.0 }
 0x280   : > { %v797_v24 = vpop.f32.mrb[18].mxu1 }
 0x281   : > { %v957_v26 = vmax.f32 %v797_v24, 0.0  ;;  %v1883_v27 = vpop.f32.mrb[19].mxu1 }
 0x283   : > { %v968_v29 = vpack.c.bf16 %v957_v26, %v956_v25 }
 0x285   : > { %1926 = vmatprep.mubr.bf16.mxu0 %v968_v29 }
 0x286   : > { %v843_v30 = vpop.f32.mrb[20].mxu1 }
 0x287   : > { %v1888_v31 = vpop.f32.mrb[21].mxu1  ;;  %v958_v33 = vmax.f32 %v843_v30, 0.0 }
 0x288   : > { %v846_v32 = vpop.f32.mrb[22].mxu1 }
 0x289   : > { %v959_v34 = vmax.f32 %v846_v32, 0.0  ;;  %v1889_v36 = vpop.f32.mrb[23].mxu1 }
 0x28b   : > { %v969_v37 = vpack.c.bf16 %v959_v34, %v958_v33 }
 0x28d   : > { %1927 = vmatmul.mubr.bf16.gmra.mrb[24].mxu0 %v969_v37 }
 0x28e   : > { %v892_v38 = vpop.f32.mrb[24].mxu1 }
 0x28f   : > { %v1894_v39 = vpop.f32.mrb[25].mxu1  ;;  %v960_v41 = vmax.f32 %v892_v38, 0.0 }
 0x290   : > { %v895_v40 = vpop.f32.mrb[26].mxu1 }
 0x291   : > { %v961_v43 = vmax.f32 %v895_v40, 0.0  ;;  %v1895_v44 = vpop.f32.mrb[27].mxu1 }
 0x293   : > { %v970_v45 = vpack.c.bf16 %v961_v43, %v960_v41 }
 0x295   : > { %1930 = vmatprep.mubr.bf16.mxu0 %v970_v45 }
 0x296   : > { %v941_v46 = vpop.f32.mrb[28].mxu1 }
 0x297   : > { %v1900_v47 = vpop.f32.mrb[29].mxu1  ;;  %v962_v54 = vmax.f32 %v941_v46, 0.0 }
 0x298   : > { %v944_v48 = vpop.f32.mrb[30].mxu1 }
 0x299   : > { %v963_v55 = vmax.f32 %v944_v48, 0.0  ;;  %v1901_v56 = vpop.f32.mrb[31].mxu1 }
 0x29b   : > { %v971_v57 = vpack.c.bf16 %v963_v55, %v962_v54 }
 0x29d   : > { %1931 = vmatmul.mubr.bf16.gmra.mrb[28].mxu0 %v971_v57 }
 0x29e   : > { %1960 = vmatprep.mubr.msk.bf16.mxu0 %vm2293_vm0, %v2292_v16 }
 0x340   : > { %v1920_v58 = vpop.f32.mrb[16].mxu0 }
 0x341   : > { %v1054_v59 = vpop.f32.mrb[17].mxu0 }
 0x342   : > { %v1921_v60 = vpop.f32.mrb[18].mxu0 }
 0x343   : > { %v1118_v61 = vpack.c.bf16 %v1921_v60, %v1920_v58  ;;  %v1057_v62 = vpop.f32.mrb[19].mxu0 }
 0x344   : > { %v1117_v63 = vpack.c.bf16 %v1057_v62, %v1054_v59 }
 0x346   : > { %1935 = vmatpush3.bf16.msra.mxu1 %v1117_v63 }
 0x347   : > { %1940 = vmatprep.subr.bf16.mxu1 %v2292_v16 }
 0x349   : > { %1937 = vmatmul.mubr.msk.bf16.vlgmr.msra.gmra.mrb[32].mxu1 %vm560_vm1, %v2578_v28 }
 0x34a   : > { %1941 = vmatpush3.bf16.msra.mxu1 %v1118_v61  ;;  %1942 = vmatprep.mubr.msk.bf16.mxu1 %vm2293_vm0, %v2292_v16 }
 0x34b   : > { %1946 = vmatprep.subr.bf16.mxu1 %v2292_v16 }
 0x350   : > { %v1924_v0 = vpop.f32.mrb[20].mxu0 }
 0x351   : > { %v1070_v1 = vpop.f32.mrb[21].mxu0  ;;  %1943 = vmatmul.mubr.msk.bf16.vlgmr.msra.gmra.mrb[36].mxu1 %vm560_vm1, %v2587_v35 }
 0x352   : > { %v1925_v2 = vpop.f32.mrb[22].mxu0  ;;  %1948 = vmatprep.mubr.msk.bf16.mxu1 %vm2293_vm0, %v2292_v16 }
 0x353   : > { %v1120_v3 = vpack.c.bf16 %v1925_v2, %v1924_v0  ;;  %v1073_v4 = vpop.f32.mrb[23].mxu0 }
 0x354   : > { %v1119_v5 = vpack.c.bf16 %v1073_v4, %v1070_v1 }
 0x356   : > { %1947 = vmatpush3.bf16.msra.mxu1 %v1119_v5 }
 0x357   : > { %1952 = vmatprep.subr.bf16.mxu1 %v2292_v16 }
 0x359   : > { %1949 = vmatmul.mubr.msk.bf16.vlgmr.msra.gmra.mrb[40].mxu1 %vm560_vm1, %v2595_v42 }
 0x35a   : > { %1953 = vmatpush3.bf16.msra.mxu1 %v1120_v3  ;;  %1954 = vmatprep.mubr.msk.bf16.mxu1 %vm2293_vm0, %v2292_v16 }
 0x35b   : > { %1964 = vmatprep.subr.bf16.mxu1 %v2292_v16 }
 0x360   : > { %v1928_v28 = vpop.f32.mrb[24].mxu0 }
 0x361   : > { %v1086_v35 = vpop.f32.mrb[25].mxu0  ;;  %1955 = vmatmul.mubr.msk.bf16.vlgmr.msra.gmra.mrb[44].mxu1 %vm560_vm1, %v2603_v49 }
 0x362   : > { %v1929_v6 = vpop.f32.mrb[26].mxu0  ;;  %1966 = vmatprep.mubr.msk.bf16.mxu1 %vm2293_vm0, %v2292_v16 }
 0x363   : > { %v1122_v7 = vpack.c.bf16 %v1929_v6, %v1928_v28  ;;  %v1089_v8 = vpop.f32.mrb[27].mxu0 }
 0x364   : > { %v1121_v9 = vpack.c.bf16 %v1089_v8, %v1086_v35 }
 0x365   : > { %1965 = vmatpush3.bf16.msra.mxu1 %v1122_v7 }
 0x366   : > { %1959 = vmatpush3.bf16.msra.mxu0 %v1121_v9  ;;  %1976 = vmatprep.subr.bf16.mxu1 %v2292_v16 }
 0x367   : > { %1970 = vmatprep.subr.bf16.mxu0 %v2292_v16 }
 0x369   : > { %1961 = vmatmul.mubr.msk.bf16.vlgmr.msra.gmra.mrb[32].mxu0 %vm560_vm1, %v2611_v50  ;;  %1967 = vmatmul.mubr.msk.bf16.vlgmr.msra.gmra.mrb[48].mxu1 %vm560_vm1, %v2619_v51 }
 0x36a   : > { %1972 = vmatprep.mubr.msk.bf16.mxu0 %vm2293_vm0, %v2292_v16  ;;  %1978 = vmatprep.mubr.msk.bf16.mxu1 %vm2293_vm0, %v2292_v16 }
 0x370   : > { %v1932_v42 = vpop.f32.mrb[28].mxu0 }
 0x371   : > { %v1102_v49 = vpop.f32.mrb[29].mxu0 }
 0x372   : > { %v1933_v10 = vpop.f32.mrb[30].mxu0 }
 0x373   : > { %v1124_v11 = vpack.c.bf16 %v1933_v10, %v1932_v42  ;;  %v1105_v12 = vpop.f32.mrb[31].mxu0 }
 0x374   : > { %v1123_v13 = vpack.c.bf16 %v1105_v12, %v1102_v49 }
 0x375   : > { %1977 = vmatpush3.bf16.msra.mxu1 %v1124_v11 }
 0x376   : > { %1971 = vmatpush3.bf16.msra.mxu0 %v1123_v13 }
 0x378   : > { %1979 = vmatmul.mubr.msk.bf16.vlgmr.msra.gmra.mrb[52].mxu1 %vm560_vm1, %v2635_v53 }
 0x379   : > { %1973 = vmatmul.mubr.msk.bf16.vlgmr.msra.gmra.mrb[36].mxu0 %vm560_vm1, %v2627_v52 }
 0x41c   : > { %v1159_v50 = vpop.f32.mrb[32].mxu1 }
 0x41d   : > { %v1453_v51 = vmax.f32 %v1159_v50, 0.0  ;;  %v1938_v14 = vpop.f32.mrb[33].mxu1 }
 0x41e   : > { %v1162_v15 = vpop.f32.mrb[34].mxu1 }
 0x41f   : > { %v1454_v17 = vmax.f32 %v1162_v15, 0.0  ;;  %v1939_v16 = vpop.f32.mrb[35].mxu1 }
 0x421   : > { %v1469_v18 = vadd.f32 %v1454_v17, %v1453_v51 }
 0x423   : > { %v1470_v19 = vrot.slane %v1469_v18, 4 }
 0x424   : > { %v1200_v20 = vpop.f32.mrb[36].mxu1 }
 0x425   : > { %v1471_v21 = vadd.f32 %v1470_v19, %v1469_v18  ;;  %v1455_v22 = vmax.f32 %v1200_v20, 0.0  ;;  %v1944_v23 = vpop.f32.mrb[37].mxu1 }
 0x426   : > { %v1203_v24 = vpop.f32.mrb[38].mxu1 }
 0x427   : > { %v1472_v25 = vrot.slane %v1471_v21, 2  ;;  %v1456_v26 = vmax.f32 %v1203_v24, 0.0  ;;  %v1945_v27 = vpop.f32.mrb[39].mxu1 }
 0x429   : > { %v1476_v53 = vadd.f32 %v1456_v26, %v1455_v22  ;;  %v1473_v29 = vadd.f32 %v1472_v25, %v1471_v21 }
 0x42b   : > { %v1477_v30 = vrot.slane %v1476_v53, 4  ;;  %v1474_v36 = vrot.slane %v1473_v29, 1 }
 0x42c   : > { %v1241_v52 = vpop.f32.mrb[40].mxu1 }
 0x42d   : > { %v1478_v31 = vadd.f32 %v1477_v30, %v1476_v53  ;;  %v1457_v32 = vmax.f32 %v1241_v52, 0.0  ;;  %v1950_v33 = vpop.f32.mrb[41].mxu1  ;;  %v1475_v43 = vadd.f32 %v1474_v36, %v1473_v29 }
 0x42e   : > { %v1244_v34 = vpop.f32.mrb[42].mxu1 }
 0x42f   : > { %v1479_v37 = vrot.slane %v1478_v31, 2  ;;  %v1458_v38 = vmax.f32 %v1244_v34, 0.0  ;;  %v1951_v39 = vpop.f32.mrb[43].mxu1  ;;  %v1525_v57 = vmul.f32 0.0625, %v1475_v43 }
 0x431   : > { %v1480_v40 = vadd.f32 %v1479_v37, %v1478_v31  ;;  %v1483_v41 = vadd.f32 %v1458_v38, %v1457_v32 }
 0x433   : > { %v1481_v44 = vrot.slane %v1480_v40, 1  ;;  %v1484_v45 = vrot.slane %v1483_v41, 4 }
 0x434   : > { %v1282_v46 = vpop.f32.mrb[44].mxu1 }
 0x435   : > { %v1482_v47 = vadd.f32 %v1481_v44, %v1480_v40  ;;  %v1485_v48 = vadd.f32 %v1484_v45, %v1483_v41  ;;  %v1459_v54 = vmax.f32 %v1282_v46, 0.0  ;;  %v1956_v55 = vpop.f32.mrb[45].mxu1 }
 0x436   : > { %v1285_v56 = vpop.f32.mrb[46].mxu1 }
 0x437   : > { %v1526_v58 = vmul.f32 0.0625, %v1482_v47  ;;  %v1486_v59 = vrot.slane %v1485_v48, 2  ;;  %v1460_v60 = vmax.f32 %v1285_v56, 0.0  ;;  %v1957_v61 = vpop.f32.mrb[47].mxu1 }
 0x439   : > { %v1542_v62 = vsel %vm1541_vm2, %v1526_v58, %v1525_v57  ;;  %v1487_v63 = vadd.f32 %v1486_v59, %v1485_v48  ;;  %v1490_v0 = vadd.f32 %v1460_v60, %v1459_v54 }
 0x43b   : > { %v1488_v1 = vrot.slane %v1487_v63, 1  ;;  %v1491_v2 = vrot.slane %v1490_v0, 4 }
 0x43c   : > { %v1323_v3 = vpop.f32.mrb[32].mxu0  ;;  %v1364_v4 = vpop.f32.mrb[48].mxu1 }
 0x43d   : > { %v1489_v5 = vadd.f32 %v1488_v1, %v1487_v63  ;;  %v1492_v28 = vadd.f32 %v1491_v2, %v1490_v0  ;;  %v1461_v35 = vmax.f32 %v1323_v3, 0.0  ;;  %v1962_v6 = vpop.f32.mrb[33].mxu0  ;;  %v1463_v7 = vmax.f32 %v1364_v4, 0.0  ;;  %v1968_v8 = vpop.f32.mrb[49].mxu1 }
 0x43e   : > { %v1326_v9 = vpop.f32.mrb[34].mxu0  ;;  %v1367_v42 = vpop.f32.mrb[50].mxu1 }
 0x43f   : > { %v1527_v49 = vmul.f32 0.0625, %v1489_v5  ;;  %v1493_v10 = vrot.slane %v1492_v28, 2  ;;  %v1462_v11 = vmax.f32 %v1326_v9, 0.0  ;;  %v1464_v12 = vmax.f32 %v1367_v42, 0.0  ;;  %v1963_v13 = vpop.f32.mrb[35].mxu0  ;;  %v1969_v50 = vpop.f32.mrb[51].mxu1 }
 0x441   : > { %v1544_v51 = vsel %vm1543_vm3, %v1527_v49, %v1542_v62  ;;  %v1494_v14 = vadd.f32 %v1493_v10, %v1492_v28  ;;  %v1497_v15 = vadd.f32 %v1462_v11, %v1461_v35  ;;  %v1504_v17 = vadd.f32 %v1464_v12, %v1463_v7 }
 0x443   : > { %v1495_v16 = vrot.slane %v1494_v14, 1  ;;  %v1498_v18 = vrot.slane %v1497_v15, 4  ;;  %v1505_v19 = vrot.slane %v1504_v17, 4 }
 0x445   : > { %v1496_v20 = vadd.f32 %v1495_v16, %v1494_v14  ;;  %v1499_v21 = vadd.f32 %v1498_v18, %v1497_v15  ;;  %v1506_v22 = vadd.f32 %v1505_v19, %v1504_v17 }
 0x447   : > { %v1528_v23 = vmul.f32 0.0625, %v1496_v20  ;;  %v1500_v24 = vrot.slane %v1499_v21, 2  ;;  %v1507_v25 = vrot.slane %v1506_v22, 2 }
 0x449   : > { %v1546_v26 = vsel %vm1545_vm4, %v1528_v23, %v1544_v51  ;;  %v1501_v27 = vadd.f32 %v1500_v24, %v1499_v21  ;;  %v1508_v53 = vadd.f32 %v1507_v25, %v1506_v22 }
 0x44b   : > { %v1502_v29 = vrot.slane %v1501_v27, 1  ;;  %v1509_v30 = vrot.slane %v1508_v53, 1  ;;  %v1446_v52 = vpop.f32.mrb[52].mxu1 }
 0x44c   : > { %v1405_v31 = vpop.f32.mrb[36].mxu0  ;;  %v1467_v32 = vmax.f32 %v1446_v52, 0.0  ;;  %v1980_v33 = vpop.f32.mrb[53].mxu1 }
 0x44d   : > { %v1503_v34 = vadd.f32 %v1502_v29, %v1501_v27  ;;  %v1510_v36 = vadd.f32 %v1509_v30, %v1508_v53  ;;  %v1974_v37 = vpop.f32.mrb[37].mxu0  ;;  %v1449_v38 = vpop.f32.mrb[54].mxu1  ;;  %v1465_v45 = vmax.f32 %v1405_v31, 0.0 }
 0x44e   : > { %v1408_v39 = vpop.f32.mrb[38].mxu0  ;;  %v1468_v40 = vmax.f32 %v1449_v38, 0.0  ;;  %v1981_v41 = vpop.f32.mrb[55].mxu1 }
 0x44f   : > { %v1529_v43 = vmul.f32 0.0625, %v1503_v34  ;;  %v1530_v44 = vmul.f32 0.0625, %v1510_v36  ;;  %v1466_v46 = vmax.f32 %v1408_v39, 0.0  ;;  %v1975_v47 = vpop.f32.mrb[39].mxu0 }
 0x450   : > { %v1518_v48 = vadd.f32 %v1468_v40, %v1467_v32 }
 0x451   : > { %v1548_v54 = vsel %vm1547_vm5, %v1529_v43, %v1546_v26  ;;  %v1511_v55 = vadd.f32 %v1466_v46, %v1465_v45 }
 0x452   : > { %v1519_v56 = vrot.slane %v1518_v48, 4  ;;  %v1550_v57 = vsel %vm1549_vm6, %v1530_v44, %v1548_v54 }
 0x453   : > { %v1512_v58 = vrot.slane %v1511_v55, 4 }
 0x454   : > { %v1520_v59 = vadd.f32 %v1519_v56, %v1518_v48 }
 0x455   : > { %v1513_v60 = vadd.f32 %v1512_v58, %v1511_v55 }
 0x456   : > { %v1521_v61 = vrot.slane %v1520_v59, 2 }
 0x457   : > { %v1514_v62 = vrot.slane %v1513_v60, 2 }
 0x458   : > { %v1522_v63 = vadd.f32 %v1521_v61, %v1520_v59 }
 0x459   : > { %v1515_v0 = vadd.f32 %v1514_v62, %v1513_v60 }
 0x45a   : > { %v1523_v1 = vrot.slane %v1522_v63, 1 }
 0x45b   : > { %v1516_v2 = vrot.slane %v1515_v0, 1 }
 0x45c   : > { %v1524_v3 = vadd.f32 %v1523_v1, %v1522_v63 }
 0x45d   : > { %v1517_v4 = vadd.f32 %v1516_v2, %v1515_v0 }
 0x45e   : > { %v1532_v28 = vmul.f32 0.0625, %v1524_v3 }
 0x45f   : > { %v1531_v5 = vmul.f32 0.0625, %v1517_v4 }
 0x461   : > { %v1552_v35 = vsel %vm1551_vm7, %v1531_v5, %v1550_v57 }
 0x462   : > { %v1554_v6 = vsel %vm1553_vm8, %v1532_v28, %v1552_v35 }
 0x463   : > { %1556 = vst [vmem:[%s286_s10] sm:$0xff] %v1554_v6 }
 0x464   : > { %2219 = shalt.err (!%p2216_p7)
}
 0x465   : > { %s2220_s7 = scalar_lea.hbm %s2683_s24, 128  ;;  %s2224_s11 = scalar_lea.hbm %s2731_s4, 256 }
 0x466   : > { %p2221_p9 = scmp.ne.s32.totalorder %s2683_s24, %s2220_s7  ;;  %p2225_p11 = scmp.lt.u32.totalorder %s2683_s24, %s2731_s4 }
 0x467   : > { %p2226_p2 = scmp.lt.u32.totalorder %s2224_s11, %s2220_s7  ;;  %p2228_p1 = scmp.lt.u32.totalorder %s2220_s7, %s2683_s24 }
 0x468   : > { %p2222_p0 = pnand %p2221_p9, %p2755_p13 }
 0x469   : > { %p2227_p12 = por %p2226_p2, %p2225_p11 }
 0x46a   : > { %p2223_p8 = pneg %p2222_p0 }
 0x46b   : > { %p2229_p6 = por %p2228_p1, %p2227_p12 }
 0x46d   : > { %p2230_p10 = pnand %p2229_p6, %p2223_p8 }
 0x46f   : > { %2233 = shalt.err (!%p2230_p10)
}
 0x470   : > { %1994 = dma.vmem_to_hbm [thread:$0]  (%p2755_p13), %s2685_s5, 128, %s2683_s24, %s1558_s30  }
 0x471 PF: > { %s1583_s9 = sand.u32 1, %s2272_s15   ;;  %p2756_p4 = scmp.ne.s32.totalorder %s2741_s22, 0 }
 0x472   : > { %p2757_p5 = scmp.ge.s32.totalorder %s2284_s18, 2  ;;  %s1584_s21 = scalar_lea.sflag [#allocation4], %s1583_s9 }
 0x474   : > { %p2011_p3 = pnand %p2757_p5, %p2756_p4 }
 0x476   : > { %2267 = dma.done.wait (!%p2011_p3), %s1584_s21, 128  }
 0x477   : > { %2269 = vsyncadd (!%p2011_p3), %s1584_s21, 4294967168  ;;  %p21_p7 = scmp.ge.s32.totalorder %s2436_s26, 4   ;;  %s2758_s15 = smov %s2276_s16 }
 0x478   : > { %s2759_s16 = smov %s2280_s17  ;;  %s2760_s17 = smov %s2452_s14 }
 0x479   : > { %s2761_s18 = smov %s2436_s26  ;;  %23 = sbr.rel (!%p21_p7) target bundleno = 10 (0xa), region = 102 }
 0x480   :  { %1589 = vsyncpa [#allocation3], 1 }
 0x481   :  { %1591 = vsyncpa [#allocation3 + $0x1], 1 }
 0x482   :  { %1592 = vsyncpa [#allocation6], 1 }
 0x483   :  { %1594 = vsyncpa [#allocation6 + $0x1], 1 }
 0x484   :  { %1595 = vsyncpa [#allocation9], 1 }
 0x485   :  { %1596 = vsyncpa [#allocation4], 1 }
 0x486   :  { %1598 = vsyncpa [#allocation4 + $0x1], 1 }

</bundles_post_ra>
